<compile_context>
chip_gen: v5e
topology: v5e:2x2
jax: 0.10.0
libtpu: 0.0.40
codegen_flags: <defaults>
</compile_context>

<pallas_src>
import functools

import jax
import jax.numpy as jnp
from jax import lax
from jax.experimental import pallas as pl
from jax.experimental.pallas import tpu as pltpu
from jax.scipy.special import erf as _jax_erf  # used only in the pure-JAX reference

EPS = 1e-5                       # nn.GroupNorm default eps
INV_SQRT2 = 0.7071067811865475


def _erf_approx(x):
    # Abramowitz & Stegun 7.1.26 rational approximation of erf (max abs err ~1.5e-7),
    # far below the 1e-3 test tolerance even after the 9*C-tap conv accumulation.
    # TODO(synk): switch to a native erf lowering if/when Mosaic exposes one.
    a1, a2, a3, a4, a5 = 0.254829592, -0.284496736, 1.421413741, -1.453152027, 1.061405429
    p = 0.3275911
    ax = jnp.abs(x)
    t = 1.0 / (1.0 + p * ax)
    poly = ((((a5 * t + a4) * t + a3) * t + a2) * t + a1) * t
    y = 1.0 - poly * jnp.exp(-ax * ax)
    return jnp.where(x < 0.0, -y, y)


def _convstack_kernel(x_ref, gamma_ref, beta_ref, w_ref, b_ref, o_ref, *, H, W):
    # x_ref   : (1, C, H*W)     VMEM  one input sample, lane-dense
    # gamma   : (C, 1)          VMEM  GroupNorm weight
    # beta    : (C, 1)          VMEM  GroupNorm bias
    # w_ref   : (C, 9*C)        VMEM  fused conv weight, w_ref[oc, k*C + ic], k = kh*3 + kw
    # b_ref   : (C, 1)          VMEM  conv bias
    # o_ref   : (1, C, H*W)     VMEM  output sample, lane-dense
    _, C, HW = x_ref.shape
    xv = x_ref[0]                                   # (C, HW) f32
    inv_n = 1.0 / float(C * HW)

    # ---------------- GroupNorm(num_groups=1): single-pass whole-sample stats ----------------
    sum_x = jnp.sum(xv, keepdims=True)              # (1, 1)
    sum_x2 = jnp.sum(xv * xv, keepdims=True)        # (1, 1)  (fused with the first reduction pass)
    mean = sum_x * inv_n
    var = jnp.maximum(sum_x2 * inv_n - mean * mean, 0.0)   # biased variance (matches torch)
    inv_std = lax.rsqrt(var + EPS)

    # ---------------- affine + GELU (exact erf form), fully vectorized ----------------
    h = (xv - mean) * (inv_std * gamma_ref[...]) + beta_ref[...]   # (C, HW)
    h = 0.5 * h * (1.0 + _erf_approx(h * INV_SQRT2))               # nn.GELU()

    # ---------------- border masks implementing padding_mode='replicate' ----------------
    p = lax.broadcasted_iota(jnp.int32, (C, HW), 1)                # flattened spatial index
    col = p % W
    m_x0 = col == 0                                                # x == 0
    m_xW = col == (W - 1)                                          # x == W-1
    m_y0 = p < W                                                   # y == 0
    m_yH = p >= (H - 1) * W                                        # y == H-1

    # In-register shifted copies of h (XLU rolls). Wrapped lanes land only on border
    # positions that the selects below overwrite, so they never reach the output.
    def shifted(dy, dx):
        off = dy * W + dx
        if off == 0:
            return h
        return pltpu.roll(h, (-off) % HW, 1)

    win = {(dy, dx): shifted(dy, dx) for dy in (-1, 0, 1) for dx in (-1, 0, 1)}

    def clamp_x(dy, dx):
        # Tap value with the x-coordinate clamped to [0, W-1] (replicate left/right edges).
        v = win[(dy, dx)]
        if dx < 0:
            return jnp.where(m_x0, win[(dy, 0)], v)
        if dx > 0:
            return jnp.where(m_xW, win[(dy, 0)], v)
        return v

    taps = []
    for dy in (-1, 0, 1):            # kh = dy + 1
        for dx in (-1, 0, 1):        # kw = dx + 1
            t = clamp_x(dy, dx)
            if dy != 0:              # clamp the y-coordinate (replicate top/bottom edges)
                edge = clamp_x(0, dx)
                m_y = m_y0 if dy < 0 else m_yH
                t = jnp.where(m_y, edge, t)
            taps.append(t)

    # ---------------- Conv2d 3x3 as ONE fused MXU matmul: (C, 9C) @ (9C, HW) ----------------
    tstack = jnp.concatenate(taps, axis=0)          # (9*C, HW), sublane-stacked taps
    acc = jnp.dot(w_ref[...], tstack, preferred_element_type=jnp.float32)   # (C, HW)

    o_ref[0] = (acc + b_ref[...]).astype(o_ref.dtype)


def conv_stack_forward(x, gamma, beta, w, b):
    N, C, H, W = x.shape
    HW = H * W

    # Lane-dense views / parameter repacking done outside the kernel (plain XLA reshapes).
    x2 = x.reshape(N, C, HW)
    # Fused conv weight: wk2[oc, k*C + ic] with k = kh*3 + kw  (from OIHW).
    wk2 = jnp.transpose(w.astype(jnp.float32), (0, 2, 3, 1)).reshape(C, 9 * C)
    g2 = gamma.astype(jnp.float32).reshape(C, 1)
    be2 = beta.astype(jnp.float32).reshape(C, 1)
    b2 = b.astype(jnp.float32).reshape(C, 1)

    kernel = functools.partial(_convstack_kernel, H=H, W=W)

    out2 = pl.pallas_call(
        kernel,
        out_shape=jax.ShapeDtypeStruct((N, C, HW), x.dtype),
        grid_spec=pltpu.PrefetchScalarGridSpec(
            num_scalar_prefetch=0,
            grid=(N,),
            in_specs=[
                pl.BlockSpec((1, C, HW), lambda n: (n, 0, 0)),    # x (lane-dense sample)
                pl.BlockSpec((C, 1), lambda n: (0, 0)),           # GroupNorm gamma
                pl.BlockSpec((C, 1), lambda n: (0, 0)),           # GroupNorm beta
                pl.BlockSpec((C, 9 * C), lambda n: (0, 0)),       # fused conv weight
                pl.BlockSpec((C, 1), lambda n: (0, 0)),           # conv bias
            ],
            out_specs=pl.BlockSpec((1, C, HW), lambda n: (n, 0, 0)),
        ),
        compiler_params=pltpu.CompilerParams(
            # Samples are independent (no carried state), so the batch axis may shard across
            # v7x's two TensorCores; neutral on v5e/v6e.
            dimension_semantics=("parallel",),
        ),
        cost_estimate=pl.CostEstimate(
            flops=2 * N * 9 * C * C * H * W,
            transcendentals=N * C * H * W,
            # in + out activations, conv weight re-read per grid step, small params.
            bytes_accessed=N * (2 * C * HW + 9 * C * C + 3 * C) * 4,
        ),
    )(x2, g2, be2, wk2, b2)

    return out2.reshape(N, C, H, W)


def conv_stack_ref(x, gamma, beta, w, b):
    # Pure-JAX reference mirroring the PyTorch forward.
    mean = jnp.mean(x, axis=(1, 2, 3), keepdims=True)
    var = jnp.mean((x - mean) ** 2, axis=(1, 2, 3), keepdims=True)
    xn = (x - mean) * lax.rsqrt(var + EPS)
    xn = xn * gamma[None, :, None, None] + beta[None, :, None, None]
    xg = 0.5 * xn * (1.0 + _jax_erf(xn * INV_SQRT2))
    xp = jnp.pad(xg, ((0, 0), (0, 0), (1, 1), (1, 1)), mode="edge")
    out = lax.conv_general_dilated(
        xp, w, window_strides=(1, 1), padding="VALID",
        dimension_numbers=("NCHW", "OIHW", "NCHW"),
        precision=lax.Precision.HIGHEST)
    return out + b[None, :, None, None]


if __name__ == "__main__":
    N, C, H, W = 2, 4, 16, 16
    key = jax.random.PRNGKey(0)
    kx, kw, kb, kg, kbe = jax.random.split(key, 5)
    x = jax.random.normal(kx, (N, C, H, W), dtype=jnp.float32)
    w = 0.1 * jax.random.normal(kw, (C, C, 3, 3), dtype=jnp.float32)     # Conv2d weight (OIHW)
    b = 0.1 * jax.random.normal(kb, (C,), dtype=jnp.float32)             # Conv2d bias
    gamma = 1.0 + 0.1 * jax.random.normal(kg, (C,), dtype=jnp.float32)   # GroupNorm weight
    beta = 0.1 * jax.random.normal(kbe, (C,), dtype=jnp.float32)         # GroupNorm bias

    out = jax.block_until_ready(conv_stack_forward(x, gamma, beta, w, b))
    ref = jax.block_until_ready(conv_stack_ref(x, gamma, beta, w, b))

    assert out.shape == (N, C, H, W) and out.dtype == jnp.float32
    assert bool(jnp.allclose(out, ref, atol=1e-3, rtol=1e-3)), \
        f"max abs err {float(jnp.max(jnp.abs(out - ref)))}"
    print("KERNEL_OK")
</pallas_src>

<mosaic_0001>
module attributes {stable_mosaic.version = 11 : i64} {
  func.func @_convstack_kernel(%arg0: i32, %arg1: memref<1x4x256xf32, #tpu.memory_space<vmem>>, %arg2: memref<4x1xf32, #tpu.memory_space<vmem>>, %arg3: memref<4x1xf32, #tpu.memory_space<vmem>>, %arg4: memref<4x36xf32, #tpu.memory_space<vmem>>, %arg5: memref<4x1xf32, #tpu.memory_space<vmem>>, %arg6: memref<1x4x256xf32, #tpu.memory_space<vmem>>) attributes {dimension_semantics = [#tpu.dimension_semantics<parallel>], iteration_bounds = array<i64: 2>, scalar_prefetch = 0 : i64, scratch_operands = 0 : i64, tpu.core_type = #tpu.core_type<tc>, window_params = [{transform_indices = @transform_0, window_bounds = array<i64: 1, 4, 256>}, {pipeline_mode = #tpu.pipeline_mode<synchronous>, transform_indices = @transform_1, window_bounds = array<i64: 4, 1>}, {pipeline_mode = #tpu.pipeline_mode<synchronous>, transform_indices = @transform_2, window_bounds = array<i64: 4, 1>}, {pipeline_mode = #tpu.pipeline_mode<synchronous>, transform_indices = @transform_3, window_bounds = array<i64: 4, 36>}, {pipeline_mode = #tpu.pipeline_mode<synchronous>, transform_indices = @transform_4, window_bounds = array<i64: 4, 1>}, {transform_indices = @transform_5, window_bounds = array<i64: 1, 4, 256>}]} {
    %c0 = arith.constant 0 : index
    %c0_0 = arith.constant 0 : index
    %c0_1 = arith.constant 0 : index
    %0 = vector.load %arg1[%c0, %c0_0, %c0_1] : memref<1x4x256xf32, #tpu.memory_space<vmem>>, vector<1x4x256xf32>
    %1 = vector.shape_cast %0 : vector<1x4x256xf32> to vector<4x256xf32>
    %2 = vector.shape_cast %1 : vector<4x256xf32> to vector<1x4x256xf32>
    %cst = arith.constant dense<0.000000e+00> : vector<1xf32>
    %3 = vector.multi_reduction <add>, %2, %cst [1, 2] : vector<1x4x256xf32> to vector<1xf32>
    %4 = vector.shape_cast %3 : vector<1xf32> to vector<1x1x1xf32>
    %5 = vector.extract %4[0, 0, 0] : f32 from vector<1x1x1xf32>
    %6 = vector.broadcast %5 : f32 to vector<1x1xf32>
    %7 = arith.mulf %1, %1 : vector<4x256xf32>
    %8 = vector.shape_cast %7 : vector<4x256xf32> to vector<1x4x256xf32>
    %cst_2 = arith.constant dense<0.000000e+00> : vector<1xf32>
    %9 = vector.multi_reduction <add>, %8, %cst_2 [1, 2] : vector<1x4x256xf32> to vector<1xf32>
    %10 = vector.shape_cast %9 : vector<1xf32> to vector<1x1x1xf32>
    %11 = vector.extract %10[0, 0, 0] : f32 from vector<1x1x1xf32>
    %12 = vector.broadcast %11 : f32 to vector<1x1xf32>
    %cst_3 = arith.constant 9.765625E-4 : f32
    %13 = vector.broadcast %cst_3 : f32 to vector<1x1xf32>
    %14 = arith.mulf %6, %13 : vector<1x1xf32>
    %cst_4 = arith.constant 9.765625E-4 : f32
    %15 = vector.broadcast %cst_4 : f32 to vector<1x1xf32>
    %16 = arith.mulf %12, %15 : vector<1x1xf32>
    %17 = arith.mulf %14, %14 : vector<1x1xf32>
    %18 = arith.subf %16, %17 : vector<1x1xf32>
    %cst_5 = arith.constant 0.000000e+00 : f32
    %19 = vector.broadcast %cst_5 : f32 to vector<1x1xf32>
    %20 = arith.maximumf %18, %19 : vector<1x1xf32>
    %cst_6 = arith.constant 9.99999974E-6 : f32
    %21 = vector.broadcast %cst_6 : f32 to vector<1x1xf32>
    %22 = arith.addf %20, %21 : vector<1x1xf32>
    %23 = math.rsqrt %22 : vector<1x1xf32>
    %24 = vector.broadcast %14 : vector<1x1xf32> to vector<4x256xf32>
    %25 = arith.subf %1, %24 : vector<4x256xf32>
    %c0_7 = arith.constant 0 : index
    %c0_8 = arith.constant 0 : index
    %26 = vector.load %arg2[%c0_7, %c0_8] : memref<4x1xf32, #tpu.memory_space<vmem>>, vector<4x1xf32>
    %27 = vector.broadcast %23 : vector<1x1xf32> to vector<4x1xf32>
    %28 = arith.mulf %27, %26 : vector<4x1xf32>
    %29 = vector.broadcast %28 : vector<4x1xf32> to vector<4x256xf32>
    %30 = arith.mulf %25, %29 : vector<4x256xf32>
    %c0_9 = arith.constant 0 : index
    %c0_10 = arith.constant 0 : index
    %31 = vector.load %arg3[%c0_9, %c0_10] : memref<4x1xf32, #tpu.memory_space<vmem>>, vector<4x1xf32>
    %32 = vector.broadcast %31 : vector<4x1xf32> to vector<4x256xf32>
    %33 = arith.addf %30, %32 : vector<4x256xf32>
    %cst_11 = arith.constant 5.000000e-01 : f32
    %34 = vector.broadcast %cst_11 : f32 to vector<4x256xf32>
    %35 = arith.mulf %34, %33 : vector<4x256xf32>
    %cst_12 = arith.constant 0.707106769 : f32
    %36 = vector.broadcast %cst_12 : f32 to vector<4x256xf32>
    %37 = arith.mulf %33, %36 : vector<4x256xf32>
    %38 = math.absf %37 : vector<4x256xf32>
    %cst_13 = arith.constant 0.327591091 : f32
    %39 = vector.broadcast %cst_13 : f32 to vector<4x256xf32>
    %40 = arith.mulf %39, %38 : vector<4x256xf32>
    %cst_14 = arith.constant 1.000000e+00 : f32
    %41 = vector.broadcast %cst_14 : f32 to vector<4x256xf32>
    %42 = arith.addf %41, %40 : vector<4x256xf32>
    %cst_15 = arith.constant 1.000000e+00 : f32
    %43 = vector.broadcast %cst_15 : f32 to vector<4x256xf32>
    %44 = arith.divf %43, %42 : vector<4x256xf32>
    %cst_16 = arith.constant 1.06140542 : f32
    %45 = vector.broadcast %cst_16 : f32 to vector<4x256xf32>
    %46 = arith.mulf %45, %44 : vector<4x256xf32>
    %cst_17 = arith.constant -1.45315206 : f32
    %47 = vector.broadcast %cst_17 : f32 to vector<4x256xf32>
    %48 = arith.addf %46, %47 : vector<4x256xf32>
    %49 = arith.mulf %48, %44 : vector<4x256xf32>
    %cst_18 = arith.constant 1.42141378 : f32
    %50 = vector.broadcast %cst_18 : f32 to vector<4x256xf32>
    %51 = arith.addf %49, %50 : vector<4x256xf32>
    %52 = arith.mulf %51, %44 : vector<4x256xf32>
    %cst_19 = arith.constant -0.284496725 : f32
    %53 = vector.broadcast %cst_19 : f32 to vector<4x256xf32>
    %54 = arith.addf %52, %53 : vector<4x256xf32>
    %55 = arith.mulf %54, %44 : vector<4x256xf32>
    %cst_20 = arith.constant 0.254829586 : f32
    %56 = vector.broadcast %cst_20 : f32 to vector<4x256xf32>
    %57 = arith.addf %55, %56 : vector<4x256xf32>
    %58 = arith.mulf %57, %44 : vector<4x256xf32>
    %cst_21 = arith.constant 0.000000e+00 : f32
    %59 = vector.broadcast %cst_21 : f32 to vector<4x256xf32>
    %60 = arith.subf %59, %38 : vector<4x256xf32>
    %61 = arith.mulf %60, %38 : vector<4x256xf32>
    %62 = math.exp %61 : vector<4x256xf32>
    %63 = arith.mulf %58, %62 : vector<4x256xf32>
    %cst_22 = arith.constant 1.000000e+00 : f32
    %64 = vector.broadcast %cst_22 : f32 to vector<4x256xf32>
    %65 = arith.subf %64, %63 : vector<4x256xf32>
    %cst_23 = arith.constant 0.000000e+00 : f32
    %66 = vector.broadcast %cst_23 : f32 to vector<4x256xf32>
    %67 = arith.cmpf olt, %37, %66 : vector<4x256xf32>
    %cst_24 = arith.constant 0.000000e+00 : f32
    %68 = vector.broadcast %cst_24 : f32 to vector<4x256xf32>
    %69 = arith.subf %68, %65 : vector<4x256xf32>
    %70 = arith.select %67, %69, %65 : vector<4x256xi1>, vector<4x256xf32>
    %cst_25 = arith.constant 1.000000e+00 : f32
    %71 = vector.broadcast %cst_25 : f32 to vector<4x256xf32>
    %72 = arith.addf %71, %70 : vector<4x256xf32>
    %73 = arith.mulf %35, %72 : vector<4x256xf32>
    %74 = tpu.iota {dimensions = array<i32: 1>} : vector<4x256xi32>
    %c16_i32 = arith.constant 16 : i32
    %c0_i32 = arith.constant 0 : i32
    %75 = arith.cmpi eq, %c16_i32, %c0_i32 : i32
    %c1_i32 = arith.constant 1 : i32
    %76 = arith.select %75, %c1_i32, %c16_i32 : i32
    %77 = vector.broadcast %76 : i32 to vector<4x256xi32>
    %78 = arith.remsi %74, %77 : vector<4x256xi32>
    %c0_i32_26 = arith.constant 0 : i32
    %79 = vector.broadcast %c0_i32_26 : i32 to vector<4x256xi32>
    %80 = arith.cmpi ne, %78, %79 : vector<4x256xi32>
    %c0_i32_27 = arith.constant 0 : i32
    %81 = vector.broadcast %c0_i32_27 : i32 to vector<4x256xi32>
    %82 = arith.cmpi slt, %78, %81 : vector<4x256xi32>
    %c0_i32_28 = arith.constant 0 : i32
    %83 = arith.cmpi slt, %76, %c0_i32_28 : i32
    %84 = vector.broadcast %83 : i1 to vector<4x256xi1>
    %85 = vector.broadcast %84 : vector<4x256xi1> to vector<4x256xi1>
    %86 = arith.xori %82, %85 : vector<4x256xi1>
    %87 = arith.andi %86, %80 : vector<4x256xi1>
    %88 = vector.broadcast %76 : i32 to vector<4x256xi32>
    %89 = arith.addi %78, %88 : vector<4x256xi32>
    %90 = arith.select %87, %89, %78 : vector<4x256xi1>, vector<4x256xi32>
    %c0_i32_29 = arith.constant 0 : i32
    %91 = vector.broadcast %c0_i32_29 : i32 to vector<4x256xi32>
    %92 = arith.cmpi eq, %90, %91 : vector<4x256xi32>
    %c15_i32 = arith.constant 15 : i32
    %93 = vector.broadcast %c15_i32 : i32 to vector<4x256xi32>
    %94 = arith.cmpi eq, %90, %93 : vector<4x256xi32>
    %c16_i32_30 = arith.constant 16 : i32
    %95 = vector.broadcast %c16_i32_30 : i32 to vector<4x256xi32>
    %96 = arith.cmpi slt, %74, %95 : vector<4x256xi32>
    %c240_i32 = arith.constant 240 : i32
    %97 = vector.broadcast %c240_i32 : i32 to vector<4x256xi32>
    %98 = arith.cmpi sge, %74, %97 : vector<4x256xi32>
    %c17_i32 = arith.constant 17 : i32
    %99 = tpu.dynamic_rotate %73 by %c17_i32 dim 1 : vector<4x256xf32>, i32 -> vector<4x256xf32>
    %c16_i32_31 = arith.constant 16 : i32
    %100 = tpu.dynamic_rotate %73 by %c16_i32_31 dim 1 : vector<4x256xf32>, i32 -> vector<4x256xf32>
    %c15_i32_32 = arith.constant 15 : i32
    %101 = tpu.dynamic_rotate %73 by %c15_i32_32 dim 1 : vector<4x256xf32>, i32 -> vector<4x256xf32>
    %c1_i32_33 = arith.constant 1 : i32
    %102 = tpu.dynamic_rotate %73 by %c1_i32_33 dim 1 : vector<4x256xf32>, i32 -> vector<4x256xf32>
    %c255_i32 = arith.constant 255 : i32
    %103 = tpu.dynamic_rotate %73 by %c255_i32 dim 1 : vector<4x256xf32>, i32 -> vector<4x256xf32>
    %c241_i32 = arith.constant 241 : i32
    %104 = tpu.dynamic_rotate %73 by %c241_i32 dim 1 : vector<4x256xf32>, i32 -> vector<4x256xf32>
    %c240_i32_34 = arith.constant 240 : i32
    %105 = tpu.dynamic_rotate %73 by %c240_i32_34 dim 1 : vector<4x256xf32>, i32 -> vector<4x256xf32>
    %c239_i32 = arith.constant 239 : i32
    %106 = tpu.dynamic_rotate %73 by %c239_i32 dim 1 : vector<4x256xf32>, i32 -> vector<4x256xf32>
    %107 = arith.select %92, %100, %99 : vector<4x256xi1>, vector<4x256xf32>
    %108 = arith.select %92, %73, %102 : vector<4x256xi1>, vector<4x256xf32>
    %109 = arith.select %96, %108, %107 : vector<4x256xi1>, vector<4x256xf32>
    %110 = arith.select %96, %73, %100 : vector<4x256xi1>, vector<4x256xf32>
    %111 = arith.select %94, %100, %101 : vector<4x256xi1>, vector<4x256xf32>
    %112 = arith.select %94, %73, %103 : vector<4x256xi1>, vector<4x256xf32>
    %113 = arith.select %96, %112, %111 : vector<4x256xi1>, vector<4x256xf32>
    %114 = arith.select %92, %73, %102 : vector<4x256xi1>, vector<4x256xf32>
    %115 = arith.select %94, %73, %103 : vector<4x256xi1>, vector<4x256xf32>
    %116 = arith.select %92, %105, %104 : vector<4x256xi1>, vector<4x256xf32>
    %117 = arith.select %92, %73, %102 : vector<4x256xi1>, vector<4x256xf32>
    %118 = arith.select %98, %117, %116 : vector<4x256xi1>, vector<4x256xf32>
    %119 = arith.select %98, %73, %105 : vector<4x256xi1>, vector<4x256xf32>
    %120 = arith.select %94, %105, %106 : vector<4x256xi1>, vector<4x256xf32>
    %121 = arith.select %94, %73, %103 : vector<4x256xi1>, vector<4x256xf32>
    %122 = arith.select %98, %121, %120 : vector<4x256xi1>, vector<4x256xf32>
    %123 = tpu.concatenate %109, %110, %113, %114, %73, %115, %118, %119, %122 in 0 : vector<4x256xf32>, vector<4x256xf32>, vector<4x256xf32>, vector<4x256xf32>, vector<4x256xf32>, vector<4x256xf32>, vector<4x256xf32>, vector<4x256xf32>, vector<4x256xf32> -> vector<36x256xf32>
    %c0_35 = arith.constant 0 : index
    %c0_36 = arith.constant 0 : index
    %124 = vector.load %arg4[%c0_35, %c0_36] : memref<4x36xf32, #tpu.memory_space<vmem>>, vector<4x36xf32>
    %cst_37 = arith.constant dense<0.000000e+00> : vector<4x256xf32>
    %125 = tpu.matmul %124, %123, %cst_37 {dimension_numbers = #tpu.dot_dimension_numbers<[1], [0], [0], [1], [0, 0, 1, 1], [], []>} : vector<4x36xf32>, vector<36x256xf32>, vector<4x256xf32> -> vector<4x256xf32>
    %c0_38 = arith.constant 0 : index
    %c0_39 = arith.constant 0 : index
    %126 = vector.load %arg5[%c0_38, %c0_39] : memref<4x1xf32, #tpu.memory_space<vmem>>, vector<4x1xf32>
    %127 = vector.broadcast %126 : vector<4x1xf32> to vector<4x256xf32>
    %128 = arith.addf %125, %127 : vector<4x256xf32>
    %c0_40 = arith.constant 0 : index
    %c0_41 = arith.constant 0 : index
    %c0_42 = arith.constant 0 : index
    %129 = vector.load %arg6[%c0_40, %c0_41, %c0_42] : memref<1x4x256xf32, #tpu.memory_space<vmem>>, vector<1x4x256xf32>
    %130 = vector.shape_cast %129 : vector<1x4x256xf32> to vector<4x256xf32>
    %131 = vector.shape_cast %128 : vector<4x256xf32> to vector<1x4x256xf32>
    tpu.vector_store %arg6[%c0_40, %c0_41, %c0_42], %131 {strides = array<i32>} : memref<1x4x256xf32, #tpu.memory_space<vmem>>, vector<1x4x256xf32>,
    return
  }
  func.func @transform_0(%arg0: i32) -> (i32, i32, i32) {
    %c0_i32 = arith.constant 0 : i32
    %c0_i32_0 = arith.constant 0 : i32
    %c0_i32_1 = arith.constant 0 : i32
    return %arg0, %c0_i32, %c0_i32_0 : i32, i32, i32
  }
  func.func @transform_1(%arg0: i32) -> (i32, i32) {
    %c0_i32 = arith.constant 0 : i32
    %c0_i32_0 = arith.constant 0 : i32
    %c0_i32_1 = arith.constant 0 : i32
    return %c0_i32, %c0_i32_0 : i32, i32
  }
  func.func @transform_2(%arg0: i32) -> (i32, i32) {
    %c0_i32 = arith.constant 0 : i32
    %c0_i32_0 = arith.constant 0 : i32
    %c0_i32_1 = arith.constant 0 : i32
    return %c0_i32, %c0_i32_0 : i32, i32
  }
  func.func @transform_3(%arg0: i32) -> (i32, i32) {
    %c0_i32 = arith.constant 0 : i32
    %c0_i32_0 = arith.constant 0 : i32
    %c0_i32_1 = arith.constant 0 : i32
    return %c0_i32, %c0_i32_0 : i32, i32
  }
  func.func @transform_4(%arg0: i32) -> (i32, i32) {
    %c0_i32 = arith.constant 0 : i32
    %c0_i32_0 = arith.constant 0 : i32
    %c0_i32_1 = arith.constant 0 : i32
    return %c0_i32, %c0_i32_0 : i32, i32
  }
  func.func @transform_5(%arg0: i32) -> (i32, i32, i32) {
    %c0_i32 = arith.constant 0 : i32
    %c0_i32_0 = arith.constant 0 : i32
    %c0_i32_1 = arith.constant 0 : i32
    return %arg0, %c0_i32, %c0_i32_0 : i32, i32, i32
  }
}

</mosaic_0001>

<bundles_post_ra>
// kernel: tpu_custom_call.1
= control target key start
LH: loop header
LB: loop body
LE: loop exit
PB: predicated region body
PF: predicated region fallthrough
CT: control target
= control target key end

     0   :  { %10 = vsyncpa [#allocation3], 0  ;;  %s1226_s0 = inlined_call_operand.hbm [shape: f32[2,4,256], index: 0, kind: input, shape index: {}]   ;;  %s1227_s1 = inlined_call_operand.vmem [shape: f32[4,1], index: 1, kind: input, shape index: {}]   ;;  %s1228_s2 = inlined_call_operand.vmem [shape: f32[4,1], index: 2, kind: input, shape index: {}]   ;;  %s1229_s3 = inlined_call_operand.vmem [shape: f32[4,36], index: 3, kind: input, shape index: {}]   ;;  %s1230_s4 = inlined_call_operand.vmem [shape: f32[4,1], index: 4, kind: input, shape index: {}]   ;;  %s1231_s5 = inlined_call_operand.hbm [shape: f32[2,4,256], index: 5, kind: output, shape index: {}]  }
   0x1   :  { %12 = vsyncpa [#allocation3 + $0x1], 0 }
   0x2   :  { %13 = vsyncpa [#allocation4], 0 }
   0x3   :  { %15 = vsyncpa [#allocation4 + $0x1], 0  ;;  %s978_s18 = smov 0   ;;  %s980_s19 = smov 0  }
   0x4   :  { %s982_s20 = smov 0   ;;  %s984_s21 = smov 0  }
   0x5 LB: > { %s999_s22 = sadd.s32 4294967295, %s936_s21   ;;  %s726_s23 = sadd.s32 4294967294, %s936_s21   ;;  %s936_s21 = sphi %s984_s21, %s1249_s21   ;;  %s932_s20 = sphi %s982_s20, %s1248_s20   ;;  %s928_s19 = sphi %s980_s19, %s1247_s19   ;;  %s924_s18 = sphi %s978_s18, %s1246_s18  }
   0x6   : > { %s1003_s24 = sadd.s32 1, %s936_s21   ;;  %s28_s25 = sadd.s32 1, %s932_s20 }
   0x7   : > { %s25_s26 = ssub.s32 %s936_s21, %s1003_s24  ;;  %p35_p0 = scmp.ne.s32.totalorder %s932_s20, %s928_s19 }
   0x8   : > { %p26_p1 = scmp.eq.s32.totalorder %s25_s26, 0  ;;  %p36_p2 = scmp.eq.s32.totalorder %s936_s21, 0 }
   0x9   : > { %p41_p3 = scmp.ne.s32.totalorder %s928_s19, %s924_s18  ;;  %p42_p4 = scmp.eq.s32.totalorder %s999_s22, 0 }
   0xa   : > { %s1015_s27 = scalar_select %p26_p1, %s932_s20, %s28_s25  }
   0xb   : > { %p1017_p5 = por %p36_p2, %p35_p0  ;;  %p1021_p6 = por %p42_p4, %p41_p3 }
   0xc   : > { %p149_p7 = scmp.eq.s32.totalorder %s999_s22, 1  ;;  %p155_p8 = scmp.eq.s32.totalorder %s726_s23, 1 }
   0xd   : > { %p762_p10 = scmp.lt.s32.totalorder %s936_s21, 2  ;;  %s187_s7 = sand.u32 1, %s932_s20  }
   0xe   : > { %p1028_p11 = por %p149_p7, %p35_p0  ;;  %p1032_p12 = por %p155_p8, %p41_p3 }
   0xf   : > { %s744_s8 = sshll.u32 %s936_s21, 3  ;;  %s729_s9 = sshll.u32 %s187_s7, 3 }
  0x10   : > { %s196_s12 = scalar_lea.hbm %s1226_s0, %s744_s8  ;;  %s191_s14 = scalar_lea.vmem [#allocation2], %s729_s9 }
  0x11   : > { %s198_s13 = sshll.u32 %s196_s12, 4  ;;  %s200_s15 = sshll.u32 %s191_s14, 4  ;;  %s199_s13 = int_to_ptr.hbm [resolvable:$true] %s198_s13  ;;  %s201_s15 = int_to_ptr.vmem [resolvable:$true] %s200_s15 }
  0x12   : > { %p1043_p13 = pnand %p762_p10, %p1017_p5  ;;  %p732_p0 = scmp.ge.s32.totalorder %s936_s21, 1 }
  0x13   : > { %p205_p1 = scmp.lt.s32.totalorder %s936_s21, 3  ;;  %s188_s17 = scalar_lea.sflag [#allocation3], %s187_s7 }
  0x14   : > { %s840_s23 = sshra.s32 %s199_s13, 4  ;;  %p844_p3 = pneg %p1043_p13  ;;  %s841_s23 = int_to_ptr.hbm [resolvable:$true] %s840_s23 }
  0x15   : > { %s842_s25 = scalar_lea.hbm %s841_s23, 8  ;;  %s847_s28 = scalar_lea.hbm %s1226_s0, 16 }
  0x16   : > { %p843_p2 = scmp.ne.s32.totalorder %s841_s23, %s842_s25  ;;  %p848_p5 = scmp.lt.s32.totalorder %s841_s23, %s1226_s0 }
  0x17   : > { %p849_p8 = scmp.lt.s32.totalorder %s847_s28, %s842_s25 }
  0x18   : > { %p845_p4 = pnand %p844_p3, %p843_p2 }
  0x19   : > { %p850_p10 = por %p849_p8, %p848_p5 }
  0x1a   : > { %p846_p7 = pneg %p845_p4 }
  0x1c   : > { %p851_p9 = pnand %p850_p10, %p846_p7 }
  0x1e   : > { %854 = shalt.err (!%p851_p9)
}
  0x1f   : > { %757 = dma.hbm_to_vmem [thread:$0]  (!%p1043_p13), %s199_s13, 128, %s201_s15, %s188_s17  }
  0x20   : > { %p206_p2 = pnand %p732_p0, %p205_p1 }
  0x21   : > { %s1064_s7 = sand.u32 (!%p206_p2), 1, %s928_s19  }
  0x22   : > { %209 = sbr.rel (%p206_p2) target bundleno = 777 (0x309), region = 40  ;;  %s733_s11 = sshll.u32 (!%p206_p2), %s1064_s7, 3 }
  0x23   : > { %s212_s12 = scalar_lea.sflag (!%p206_p2), [#allocation3], %s1064_s7  ;;  %s215_s14 = scalar_lea.vmem (!%p206_p2), [#allocation2], %s733_s11 }
  0x27   : > { %915 = dma.done.wait (%p1021_p6), %s212_s12, 128  }
  0x28   : > { %917 = vsyncadd (%p1021_p6), %s212_s12, 4294967168  ;;  %v1074_v0 = vld [vmem:[%s215_s14] sm:$0xff]  ;;  %vm250_vm0 = vcmask 1043456   ;;  %v938_v26 = vmov 0   ;;  %v301_v41 = vld [vmem:[%s1227_s1] sm:$0xf] }
  0x29   : > { %245 = vst [vmem:[#allocation1] ss:$2 sm:$0xff] %v1074_v0  ;;  %v264_v1 = vmul.f32 %v1074_v0, %v1074_v0  ;;  %806 = vset.pattern.permute.xlu1 %v938_v26  ;;  %832 = vset.pattern.permute.xlu2 %v938_v26  ;;  %v313_v44 = vld [vmem:[%s1228_s2] sm:$0xf]  ;;  %v939_v45 = vmov 839922192  }
  0x2a   : > { %833 = vset.pattern.permute.xlu0 %v938_v26  ;;  %v308_v46 = vunpack.c.l.s4 %v939_v45  ;;  %s940_s25 = smov 1   ;;  %s941_s26 = smov 127  }
  0x2b   : > { %s942_s8 = smov 113   ;;  %s943_s28 = smov 112  }
  0x2c   : > { %v309_v48 = vunpack.c.0.s8 %v308_v46  ;;  %s944_s9 = smov 15   ;;  %s945_s10 = smov 111  }
  0x2d   : > { %s946_s12 = smov 16   ;;  %s947_s14 = smov 17  }
  0x2e   : > { %s745_s17 = sshll.u32 %s999_s22, 3  ;;  %s640_s22 = scalar_lea.sflag [#allocation4], %s1064_s7 }
  0x30   : > { %v246_v2 = vld.sshfl [vmem:[#allocation1] sm:$0xff pattern:$0x75316420]  ;;  %v247_v3 = vld.sshfl [vmem:[#allocation1 + $0x8] sm:$0xff pattern:$0x75316420] }
  0x31   : > { %v251_v4 = vsel %vm250_vm0, %v246_v2, 0.0  ;;  %v252_v5 = vsel %vm250_vm0, %v247_v3, 0.0  ;;  %266 = vst [vmem:[#allocation1] ss:$2 sm:$0xff] %v264_v1 }
  0x32   : > { %v253_v6 = vadd.f32 %v252_v5, %v251_v4 }
  0x34   : > { %254 = vadd.xlane.f32.xlu0 %v253_v6 }
  0x38   : > { %v267_v7 = vld.sshfl [vmem:[#allocation1] sm:$0xff pattern:$0x75316420]  ;;  %v268_v8 = vld.sshfl [vmem:[#allocation1 + $0x8] sm:$0xff pattern:$0x75316420] }
  0x39   : > { %v271_v9 = vsel %vm250_vm0, %v267_v7, 0.0  ;;  %v272_v10 = vsel %vm250_vm0, %v268_v8, 0.0 }
  0x3a   : > { %v273_v11 = vadd.f32 %v272_v10, %v271_v9 }
  0x3c   : > { %274 = vadd.xlane.f32.xlu0 %v273_v11 }
  0xa7   : > { %v255_v12 = vpop.xlane.xlu0 %254 }
  0xa8   : > { %v256_v13 = vrot.slane %v255_v12, 4 }
  0xaa   : > { %v257_v14 = vadd.f32 %v256_v13, %v255_v12 }
  0xac   : > { %v258_v15 = vrot.slane %v257_v14, 2 }
  0xae   : > { %v259_v16 = vadd.f32 %v258_v15, %v257_v14 }
  0xaf   : > { %v275_v17 = vpop.xlane.xlu0 %274 }
  0xb0   : > { %v276_v18 = vrot.slane %v275_v17, 4  ;;  %v260_v19 = vrot.slane %v259_v16, 1 }
  0xb2   : > { %v277_v20 = vadd.f32 %v276_v18, %v275_v17  ;;  %v261_v21 = vadd.f32 %v260_v19, %v259_v16 }
  0xb4   : > { %v278_v22 = vrot.slane %v277_v20, 2  ;;  %746 = vpush %v261_v21 }
  0xb6   : > { %v279_v23 = vadd.f32 %v278_v22, %v277_v20 }
  0xb8   : > { %v280_v24 = vrot.slane %v279_v23, 1 }
  0xba   : > { %v281_v25 = vadd.f32 %v280_v24, %v279_v23 }
  0xbc   : > { %748 = vpush %v281_v25 }
  0xe5   : > { %s747_s29 = spop %746 }
  0xe6   : > { %v263_v27 = vstv %s747_s29 }
  0xe7   : > { %v284_v28 = vmul.f32 0.0009765625, %v263_v27 }
  0xe9   : > { %v286_v30 = vmul.f32 %v284_v28, %v284_v28  ;;  %v300_v50 = vsub.f32 %v1074_v0, %v284_v28 }
  0xed   : > { %s749_s13 = spop %748 }
  0xee   : > { %v283_v29 = vstv %s749_s13 }
  0xef   : > { %v285_v31 = vmul.f32 0.0009765625, %v283_v29 }
  0xf1   : > { %v287_v32 = vsub.f32 %v285_v31, %v286_v30 }
  0xf3   : > { %v288_v33 = vmax.f32 %v287_v32, 0.0 }
  0xf5   : > { %v289_v34 = vadd.f32 1e-05, %v288_v33 }
  0xf7   : > { %834 = vrsqrt.f32 %v289_v34  ;;  %vm296_vm2 = vweird.f32 %v289_v34 }
  0xfd   : > { %v835_v35 = vpop.eup %834 }
  0xfe   : > { %v291_v36 = vmul.f32 %v835_v35, %v289_v34  ;;  %vm297_vm1 = vweird.f32 %v835_v35 }
  0xff   : > { %vm298_vm3 = vmor %vm296_vm2, %vm297_vm1 }
 0x100   : > { %v292_v37 = vmul.f32 %v835_v35, %v291_v36 }
 0x102   : > { %v293_v38 = vmul.f32 0.5, %v292_v37 }
 0x104   : > { %v294_v39 = vsub.f32 1.5, %v293_v38 }
 0x106   : > { %v295_v40 = vmul.f32 %v835_v35, %v294_v39 }
 0x108   : > { %v299_v42 = vsel %vm298_vm3, %v835_v35, %v295_v40 }
 0x109   : > { %v302_v43 = vmul.f32 %v301_v41, %v299_v42 }
 0x10b   : > { %305 = vperm.xlu1 %806, %v302_v43  }
 0x113   : > { %316 = vperm.xlu1 %806, %v313_v44  }
 0x17d   : > { %v306_v47 = vpop.permute.xlu1 %305 }
 0x17e   : > { %v310_v49 = vperm.slane %v306_v47, %v309_v48 }
 0x180   : > { %v312_v52 = vmul.f32 %v310_v49, %v300_v50 }
 0x185   : > { %v317_v51 = vpop.permute.xlu1 %316 }
 0x186   : > { %v321_v53 = vperm.slane %v317_v51, %v309_v48 }
 0x188   : > { %v323_v54 = vadd.f32 %v321_v53, %v312_v52 }
 0x18a   : > { %v325_v55 = vmul.f32 0.70710677, %v323_v54  ;;  %v324_v22 = vmul.f32 0.5, %v323_v54 }
 0x18c   : > { %v326_v56 = vand.u32 2147483647, %v325_v55  ;;  %vm359_vm8 = vcmp.lt.f32.partialorder %v325_v55, 0.0  ;;  %v364_v55 = vlaneseq }
 0x18e   : > { %v327_v57 = vmul.f32 0.3275911, %v326_v56  ;;  %v353_v5 = vsub.f32 0.0, %v326_v56 }
 0x190   : > { %v328_v58 = vadd.f32 1.0, %v327_v57  ;;  %v354_v8 = vmul.f32 %v353_v5, %v326_v56  ;;  %v1092_v56 = vand.u32 127, %v364_v55 }
 0x192   : > { %836 = vrcp.f32 %v328_v58  ;;  %v340_v62 = vand.u32 2147483648, %v328_v58  ;;  %v338_v1 = vand.u32 2147483647, %v328_v58  ;;  %vm334_vm5 = vweird.f32 %v328_v58 }
 0x193   : > { %v355_v11 = vmul.f32 1.442695, %v354_v8  ;;  %vm444_vm9 = vcmp.lt.s32.totalorder %v1092_v56, 1  ;;  %vm456_vm10 = vcmp.lt.s32.totalorder %v1092_v56, 127  ;;  %vm480_vm12 = vcmp.lt.s32.totalorder %v1092_v56, 112 }
 0x194   : > { %v341_v0 = vor.u32 1.1754944e-38, %v340_v62  ;;  %vm339_vm7 = vcmp.eq.f32.partialorder %v338_v1, 8.507059e+37  ;;  %vm468_vm1 = vcmp.lt.s32.totalorder %v1092_v56, 113  ;;  %vm395_vm3 = vcmp.lt.s32.totalorder %v1092_v56, 16  ;;  %v576_v8 = vld [vmem:[%s1229_s3] sm:$0xf] }
 0x195   : > { %838 = vpow2.f32 %v355_v11 }
 0x198   : > { %v837_v59 = vpop.eup %836 }
 0x199   : > { %v330_v60 = vmul.f32 %v837_v59, %v328_v58  ;;  %vm335_vm4 = vweird.f32 %v837_v59 }
 0x19a   : > { %vm336_vm6 = vmor %vm334_vm5, %vm335_vm4  ;;  %vm432_vm4 = vcmp.lt.s32.totalorder %v1092_v56, 15  ;;  %vm492_vm5 = vcmp.lt.s32.totalorder %v1092_v56, 111 }
 0x19b   : > { %v331_v61 = vsub.f32 1.0, %v330_v60  ;;  %v839_v17 = vpop.eup %838  ;;  %v366_v60 = vadd.s32 128, %v1092_v56 }
 0x19d   : > { %v332_v63 = vmul.f32 %v837_v59, %v331_v61  ;;  %v378_v1 = vand.u32 15, %v366_v60  ;;  %vm398_vm2 = vcmp.ge.s32.totalorder %v366_v60, 240 }
 0x19f   : > { %v333_v2 = vadd.f32 %v837_v59, %v332_v63  ;;  %v371_v63 = vand.u32 15, %v1092_v56  ;;  %vm1106_vm13 = vcmp.eq.s32.totalorder %v378_v1, 0  ;;  %vm1114_vm15 = vcmp.eq.s32.totalorder %v378_v1, 15 }
 0x1a1   : > { %v337_v3 = vsel %vm336_vm6, %v837_v59, %v333_v2  ;;  %v577_v59 = vld [vmem:[%s1230_s4] sm:$0xf]  ;;  %vm1101_vm11 = vcmp.eq.s32.totalorder %v371_v63, 0  ;;  %vm1110_vm14 = vcmp.eq.s32.totalorder %v371_v63, 15  ;;  %vm409_vm6 = vcmp.lt.s32.totalorder %v1092_v56, 17 }
 0x1a2   : > { %v342_v4 = vsel %vm339_vm7, %v341_v0, %v337_v3  ;;  %vm583_vm7 = vcmask 293888  }
 0x1a3   : > { %v344_v6 = vmul.f32 1.0614054, %v342_v4 }
 0x1a5   : > { %v345_v7 = vadd.f32 -1.4531521, %v344_v6 }
 0x1a7   : > { %v346_v9 = vmul.f32 %v345_v7, %v342_v4 }
 0x1a9   : > { %v347_v10 = vadd.f32 1.4214138, %v346_v9 }
 0x1ab   : > { %v348_v12 = vmul.f32 %v347_v10, %v342_v4 }
 0x1ad   : > { %v349_v13 = vadd.f32 -0.28449672, %v348_v12 }
 0x1af   : > { %v350_v14 = vmul.f32 %v349_v13, %v342_v4 }
 0x1b1   : > { %v351_v15 = vadd.f32 0.2548296, %v350_v14 }
 0x1b3   : > { %v352_v16 = vmul.f32 %v351_v15, %v342_v4 }
 0x1b5   : > { %v357_v18 = vmul.f32 %v839_v17, %v352_v16 }
 0x1b7   : > { %v358_v19 = vsub.f32 1.0, %v357_v18 }
 0x1b9   : > { %v360_v20 = vsub.f32 0.0, %v358_v19 }
 0x1bb   : > { %v361_v21 = vsel %vm359_vm8, %v360_v20, %v358_v19 }
 0x1bc   : > { %v362_v23 = vadd.f32 1.0, %v361_v21 }
 0x1be   : > { %v363_v24 = vmul.f32 %v362_v23, %v324_v22 }
 0x1c0   : > { %400 = vst [vmem:[#allocation1] ss:$2 sm:$0xff] %v363_v24 }
 0x1c7   : > { %v401_v25 = vld.sshfl [vmem:[#allocation1] sm:$0xff pattern:$0x75316420]  ;;  %v402_v26 = vld.sshfl [vmem:[#allocation1 + $0x8] sm:$0xff pattern:$0x75316420] }
 0x1c8   : > { %412 = vst [vmem:[#allocation1] ss:$2 sm:$0xff] %v363_v24  ;;  %v827_v47 = vpack.i.bf16 %v402_v26, %v401_v25 }
 0x1cf   : > { %v413_v27 = vld.sshfl [vmem:[#allocation1] sm:$0xff pattern:$0x75316420]  ;;  %v414_v28 = vld.sshfl [vmem:[#allocation1 + $0x8] sm:$0xff pattern:$0x75316420] }
 0x1d0   : > { %423 = vst [vmem:[#allocation1] ss:$2 sm:$0xff] %v363_v24  ;;  %v817_v44 = vpack.i.bf16 %v414_v28, %v413_v27 }
 0x1d7   : > { %v424_v29 = vld.sshfl [vmem:[#allocation1] sm:$0xff pattern:$0x75316420]  ;;  %v425_v30 = vld.sshfl [vmem:[#allocation1 + $0x8] sm:$0xff pattern:$0x75316420] }
 0x1d8   : > { %435 = vst [vmem:[#allocation1] ss:$2 sm:$0xff] %v363_v24  ;;  %v822_v41 = vpack.i.bf16 %v425_v30, %v424_v29 }
 0x1df   : > { %v436_v31 = vld.sshfl [vmem:[#allocation1] sm:$0xff pattern:$0x75316420]  ;;  %v437_v32 = vld.sshfl [vmem:[#allocation1 + $0x8] sm:$0xff pattern:$0x75316420] }
 0x1e0   : > { %v807_v33 = vpack.i.bf16 %v437_v32, %v436_v31  ;;  %447 = vst [vmem:[#allocation1] ss:$2 sm:$0xff] %v363_v24 }
 0x1e2   : > { %808 = vrot.lane.b32.xlu2 %v807_v33, %s940_s25 }
 0x1e7   : > { %v448_v34 = vld.sshfl [vmem:[#allocation1] sm:$0xff pattern:$0x75316420]  ;;  %v449_v35 = vld.sshfl [vmem:[#allocation1 + $0x8] sm:$0xff pattern:$0x75316420] }
 0x1e8   : > { %459 = vst [vmem:[#allocation1] ss:$2 sm:$0xff] %v363_v24 }
 0x1ea   : > { %452 = vrot.lane.b32.xlu2 %v448_v34, %s941_s26 }
 0x1ef   : > { %v460_v36 = vld.sshfl [vmem:[#allocation1] sm:$0xff pattern:$0x75316420]  ;;  %v461_v37 = vld.sshfl [vmem:[#allocation1 + $0x8] sm:$0xff pattern:$0x75316420] }
 0x1f0   : > { %v812_v38 = vpack.i.bf16 %v461_v37, %v460_v36  ;;  %471 = vst [vmem:[#allocation1] ss:$2 sm:$0xff] %v363_v24 }
 0x1f2   : > { %454 = vrot.lane.b32.xlu2 %v449_v35, %s941_s26  ;;  %813 = vrot.lane.b32.xlu1 %v812_v38, %s942_s8  ;;  %s651_s26 = scalar_lea.hbm %s1231_s5, %s745_s17  ;;  %s242_s8 = scalar_lea.vmem [#allocation5], %s733_s11 }
 0x1f3   : > { %s890_s11 = scalar_lea.hbm %s1231_s5, 16 }
 0x1f7   : > { %v472_v39 = vld.sshfl [vmem:[#allocation1] sm:$0xff pattern:$0x75316420]  ;;  %v473_v40 = vld.sshfl [vmem:[#allocation1 + $0x8] sm:$0xff pattern:$0x75316420] }
 0x1f8   : > { %476 = vrot.lane.b32.xlu0 %v472_v39, %s943_s28  ;;  %483 = vst [vmem:[#allocation1] ss:$2 sm:$0xff] %v363_v24 }
 0x1fa   : > { %478 = vrot.lane.b32.xlu1 %v473_v40, %s943_s28  ;;  %s653_s28 = sshll.u32 %s242_s8, 4  ;;  %s654_s28 = int_to_ptr.vmem [resolvable:$true] %s653_s28 }
 0x1ff   : > { %v484_v42 = vld.sshfl [vmem:[#allocation1] sm:$0xff pattern:$0x75316420]  ;;  %v485_v43 = vld.sshfl [vmem:[#allocation1 + $0x8] sm:$0xff pattern:$0x75316420] }
 0x200   : > { %823 = vrot.lane.b32.xlu0 %v822_v41, %s944_s9  ;;  %488 = vrot.lane.b32.xlu2 %v484_v42, %s945_s10  ;;  %497 = vst [vmem:[#allocation1] ss:$2 sm:$0xff] %v363_v24  ;;  %s655_s9 = sshll.u32 %s651_s26, 4  ;;  %s656_s9 = int_to_ptr.hbm [resolvable:$true] %s655_s9 }
 0x202   : > { %490 = vrot.lane.b32.xlu1 %v485_v43, %s945_s10  ;;  %s884_s10 = sshra.s32 %s656_s9, 4  ;;  %s885_s10 = int_to_ptr.hbm [resolvable:$true] %s884_s10 }
 0x203   : > { %p891_p0 = scmp.lt.s32.totalorder %s885_s10, %s1231_s5 }
 0x207   : > { %v498_v45 = vld.sshfl [vmem:[#allocation1] sm:$0xff pattern:$0x75316420]  ;;  %v499_v46 = vld.sshfl [vmem:[#allocation1 + $0x8] sm:$0xff pattern:$0x75316420] }
 0x208   : > { %506 = vst [vmem:[#allocation1] ss:$2 sm:$0xff] %v363_v24  ;;  %818 = vrot.lane.b32.xlu2 %v817_v44, %s946_s12  ;;  %s886_s12 = scalar_lea.hbm %s885_s10, 8 }
 0x209   : > { %p887_p6 = scmp.ne.s32.totalorder %s885_s10, %s886_s12  ;;  %p892_p1 = scmp.lt.s32.totalorder %s890_s11, %s886_s12 }
 0x20a   : > { %828 = vrot.lane.b32.xlu1 %v827_v47, %s947_s14 }
 0x20b   : > { %p888_p9 = pnand %p887_p6, %p1028_p11  ;;  %p893_p3 = por %p892_p1, %p891_p0 }
 0x20d   : > { %p889_p13 = pneg %p888_p9 }
 0x20f   : > { %v1090_v48 = vld.sshfl [vmem:[#allocation1] sm:$0xff pattern:$0x75316420]  ;;  %p894_p4 = pnand %p893_p3, %p889_p13 }
 0x210   : > { %515 = vst [vmem:[#allocation1] ss:$2 sm:$0xff] %v363_v24  ;;  %580 = vperm.xlu2 %832, %v577_v59  }
 0x217   : > { %v516_v49 = vld.sshfl [vmem:[#allocation1] sm:$0xff pattern:$0x75316420]  ;;  %v517_v50 = vld.sshfl [vmem:[#allocation1 + $0x8] sm:$0xff pattern:$0x75316420] }
 0x218   : > { %528 = vst [vmem:[#allocation1] ss:$2 sm:$0xff] %v363_v24 }
 0x21f   : > { %v530_v51 = vld.sshfl [vmem:[#allocation1 + $0x8] sm:$0xff pattern:$0x75316420] }
 0x220   : > { %551 = vst [vmem:[#allocation1] ss:$2 sm:$0xff] %v363_v24 }
 0x23c   : > { %v809_v52 = vpop.permute.xlu2 %808 }
 0x23d   : > { %v811_v61 = vunpack.i.h.bf16 %v809_v52  ;;  %v810_v62 = vunpack.i.l.bf16 %v809_v52 }
 0x23f   : > { %v446_v0 = vsel %vm444_vm9, %v811_v61, %v810_v62  ;;  %v445_v5 = vsel %vm444_vm9, %v810_v62, %v811_v61 }
 0x240   : > { %v1120_v13 = vsel %vm1101_vm11, %v498_v45, %v446_v0  ;;  %v503_v18 = vsel %vm1106_vm13, %v499_v46, %v445_v5 }
 0x241   : > { %v547_v21 = vrot.slane %v1120_v13, 4 }
 0x244   : > { %v453_v53 = vpop.permute.xlu2 %452 }
 0x24c   : > { %v455_v54 = vpop.permute.xlu2 %454 }
 0x24d   : > { %v457_v10 = vsel %vm456_vm10, %v453_v53, %v455_v54  ;;  %v458_v14 = vsel %vm456_vm10, %v455_v54, %v453_v53  ;;  %v553_v54 = vld.sshfl [vmem:[#allocation1 + $0x8] sm:$0xff pattern:$0x75316420] }
 0x24e   : > { %v520_v20 = vsel %vm1110_vm14, %v516_v49, %v457_v10  ;;  %v521_v24 = vsel %vm1114_vm15, %v517_v50, %v458_v14 }
 0x24f   : > { %v558_v34 = vrot.slane %v520_v20, 4  ;;  %v559_v44 = vrot.slane %v521_v24, 4 }
 0x25a   : > { %v489_v57 = vpop.permute.xlu2 %488 }
 0x262   : > { %v819_v6 = vpop.permute.xlu2 %818 }
 0x263   : > { %v821_v16 = vunpack.i.h.bf16 %v819_v6  ;;  %v820_v17 = vunpack.i.l.bf16 %v819_v6 }
 0x264   : > { %v814_v58 = vpop.permute.xlu1 %813 }
 0x265   : > { %v816_v11 = vunpack.i.h.bf16 %v814_v58  ;;  %v815_v12 = vunpack.i.l.bf16 %v814_v58  ;;  %v422_v30 = vsel %vm395_vm3, %v821_v16, %v820_v17  ;;  %v421_v52 = vsel %vm395_vm3, %v820_v17, %v821_v16 }
 0x266   : > { %v548_v58 = vrot.slane %v503_v18, 4  ;;  %v511_v63 = vsel %vm395_vm3, %v1090_v48, %v422_v30  ;;  %v542_v0 = vrot.slane %v421_v52, 4 }
 0x267   : > { %v470_v22 = vsel %vm468_vm1, %v816_v11, %v815_v12  ;;  %v469_v29 = vsel %vm468_vm1, %v815_v12, %v816_v11  ;;  %v541_v6 = vrot.slane %v511_v63, 4 }
 0x26a   : > { %v477_v2 = vpop.permute.xlu0 %476  ;;  %v581_v3 = vpop.permute.xlu2 %580 }
 0x26c   : > { %v479_v4 = vpop.permute.xlu1 %478 }
 0x26d   : > { %v482_v15 = vsel %vm480_vm12, %v479_v4, %v477_v2  ;;  %v481_v19 = vsel %vm480_vm12, %v477_v2, %v479_v4 }
 0x26e   : > { %v534_v25 = vsel %vm398_vm2, %v530_v51, %v482_v15  ;;  %v525_v26 = vsel %vm1106_vm13, %v482_v15, %v470_v22  ;;  %v564_v31 = vrot.slane %v481_v19, 4  ;;  %v524_v33 = vsel %vm1101_vm11, %v481_v19, %v469_v29  ;;  %v552_v51 = vld.sshfl [vmem:[#allocation1] sm:$0xff pattern:$0x75316420] }
 0x26f   : > { %v565_v38 = vrot.slane %v534_v25, 4  ;;  %v527_v41 = vsel %vm398_vm2, %v503_v18, %v525_v26  ;;  %v572_v53 = vsel %vm250_vm0, %v552_v51, %v558_v34 }
 0x270   : > { %v574_v47 = vsel %vm250_vm0, %v524_v33, %v564_v31 }
 0x271   : > { %v575_v50 = vsel %vm250_vm0, %v527_v41, %v565_v38 }
 0x272   : > { %v824_v23 = vpop.permute.xlu0 %823 }
 0x273   : > { %v826_v27 = vunpack.i.h.bf16 %v824_v23  ;;  %v825_v28 = vunpack.i.l.bf16 %v824_v23 }
 0x274   : > { %v491_v32 = vpop.permute.xlu1 %490 }
 0x275   : > { %v434_v35 = vsel %vm432_vm4, %v826_v27, %v825_v28  ;;  %v493_v36 = vsel %vm492_vm5, %v489_v57, %v491_v32  ;;  %v494_v37 = vsel %vm492_vm5, %v491_v32, %v489_v57  ;;  %v433_v46 = vsel %vm432_vm4, %v825_v28, %v826_v27 }
 0x276   : > { %v535_v39 = vsel %vm1110_vm14, %v481_v19, %v493_v36  ;;  %v536_v40 = vsel %vm1114_vm15, %v482_v15, %v494_v37  ;;  %v513_v42 = vsel %vm1110_vm14, %v422_v30, %v434_v35  ;;  %v514_v55 = vsel %vm1114_vm15, %v421_v52, %v433_v46 }
 0x277   : > { %735 = vmatpush.msk.msra.mxu0 %vm250_vm0, %v535_v39  ;;  %v538_v43 = vsel %vm398_vm2, %v521_v24, %v536_v40  ;;  %v522_v45 = vsel %vm395_vm3, %v520_v20, %v513_v42  ;;  %v573_v57 = vsel %vm250_vm0, %v553_v54, %v559_v44  ;;  %v571_v62 = vsel %vm250_vm0, %v514_v55, %v548_v58 }
 0x278   : > { %737 = vmatpush.msk.msra.mxu1 %vm250_vm0, %v538_v43  ;;  %v570_v49 = vsel %vm250_vm0, %v522_v45, %v547_v21 }
 0x279   : > { %605 = vmatpush.msra.mxu0 %v574_v47 }
 0x27a   : > { %625 = vmatpush.msra.mxu1 %v575_v50 }
 0x27b   : > { %606 = vmatpush.msra.mxu0 %v572_v53 }
 0x27c   : > { %v829_v59 = vpop.permute.xlu1 %828  ;;  %626 = vmatpush.msra.mxu1 %v573_v57 }
 0x27d   : > { %v831_v60 = vunpack.i.h.bf16 %v829_v59  ;;  %v830_v61 = vunpack.i.l.bf16 %v829_v59  ;;  %607 = vmatpush.msra.mxu0 %v570_v49 }
 0x27e   : > { %627 = vmatpush.msra.mxu1 %v571_v62 }
 0x27f   : > { %v411_v1 = vsel %vm409_vm6, %v831_v60, %v830_v61  ;;  %v410_v2 = vsel %vm409_vm6, %v830_v61, %v831_v60 }
 0x280   : > { %v496_v4 = vsel %vm1106_vm13, %v421_v52, %v410_v2  ;;  %v495_v5 = vsel %vm1101_vm11, %v422_v30, %v411_v1 }
 0x281   : > { %v569_v48 = vsel %vm250_vm0, %v496_v4, %v542_v0  ;;  %v504_v9 = vsel %vm395_vm3, %v1120_v13, %v495_v5 }
 0x282   : > { %628 = vmatpush.msra.mxu1 %v569_v48  ;;  %v568_v7 = vsel %vm250_vm0, %v504_v9, %v541_v6 }
 0x283   : > { %608 = vmatpush.msra.mxu0 %v568_v7  ;;  %738 = vmatmul.msk.f32.vlgmr.msra.gmra.mxu1 %vm583_vm7, %v576_v8 }
 0x284   : > { %736 = vmatmul.msk.f32.vlgmr.msra.gmra.mxu0 %vm583_vm7, %v576_v8 }
 0x300   : > { %v630_v10 = vpop.f32.mrf.mxu1 }
 0x301   : > { %v631_v11 = vadd.f32 %v630_v10, %v581_v3  ;;  %v610_v12 = vpop.f32.mrf.mxu0 }
 0x302   : > { %v611_v56 = vadd.f32 %v610_v12, %v581_v3 }
 0x303   : > { %v635_v13 = vrot.slane %v631_v11, 4 }
 0x305   : > { %v636_v14 = vsel %vm250_vm0, %v611_v56, %v635_v13 }
 0x306   : > { %638 = vst [vmem:[%s242_s8] sm:$0xff] %v636_v14 }
 0x307   : > { %897 = shalt.err (!%p894_p4)
}
 0x308   : > { %752 = dma.vmem_to_hbm [thread:$0]  (%p1028_p11), %s654_s28, 128, %s656_s9, %s640_s22  }
 0x309 PF: > { %s667_s7 = sand.u32 1, %s924_s18   ;;  %p1245_p7 = scmp.ge.s32.totalorder %s936_s21, 2 }
 0x30a   : > { %s668_s16 = scalar_lea.sflag [#allocation4], %s667_s7 }
 0x30b   : > { %p759_p5 = pnand %p1245_p7, %p1032_p12 }
 0x30d   : > { %p760_p8 = pneg %p759_p5 }
 0x30f   : > { %919 = dma.done.wait (%p760_p8), %s668_s16, 128  }
 0x310   : > { %921 = vsyncadd (%p760_p8), %s668_s16, 4294967168  ;;  %p18_p10 = scmp.ge.s32.totalorder %s1003_s24, 4   ;;  %s1246_s18 = smov %s928_s19 }
 0x311   : > { %s1247_s19 = smov %s932_s20  ;;  %s1248_s20 = smov %s1015_s27 }
 0x312   : > { %s1249_s21 = smov %s1003_s24  ;;  %20 = sbr.rel (!%p18_p10) target bundleno = 5 (0x5), region = 85 }
 0x317   :  { %674 = vsyncpa [#allocation3], 1 }
 0x318   :  { %676 = vsyncpa [#allocation3 + $0x1], 1 }
 0x319   :  { %677 = vsyncpa [#allocation4], 1 }
 0x31a   :  { %679 = vsyncpa [#allocation4 + $0x1], 1 }

</bundles_post_ra>
